<compile_context>
chip_gen: v6e
topology: v6e:2x2x1
jax: 0.10.0
libtpu: 0.0.40
codegen_flags: <defaults>
</compile_context>

<pallas_src>
import jax
import jax.numpy as jnp
from jax.experimental import pallas as pl
from jax.experimental.pallas import tpu as pltpu


def _round_up(v: int, m: int) -> int:
    return (v + m - 1) // m * m


def _cdiv(a: int, b: int) -> int:
    return -(-a // b)


def _linear_kernel(x_ref, w_ref, b_ref, o_ref):
    # x_ref: (TM, C), w_ref: (C, Kp), b_ref: (1, Kp), o_ref: (TM, Kp)
    acc = jnp.dot(x_ref[...], w_ref[...], preferred_element_type=jnp.float32)
    o_ref[...] = (acc + b_ref[...]).astype(o_ref.dtype)


def fast_rcnn_predictor(x, weight, bias, *, tile_m: int = 512,
                        vmem_budget_bytes: int = 24 * 1024 * 1024):
    """scores = x.flatten(1) @ weight.T + bias

    x:      (N, C) or (N, C, 1, 1)
    weight: (num_classes, C)   (PyTorch nn.Linear layout)
    bias:   (num_classes,)
    """
    if x.ndim == 4:
        assert x.shape[2] == 1 and x.shape[3] == 1, "spatial dims must be [1, 1]"
    x2 = x.reshape(x.shape[0], -1)                 # flatten(start_dim=1) (no copy)
    n, c = x2.shape
    k = weight.shape[0]
    assert weight.shape == (k, c) and bias.shape == (k,)

    x_bpe = x2.dtype.itemsize
    sub = {4: 8, 2: 16, 1: 32}.get(x_bpe, 8)       # min sublane tile per dtype width

    # One-time tiny pad of W^T / b to a lane-dense K (multiple of 128).
    k_pad = _round_up(k, 128)
    w_p = jnp.zeros((c, k_pad), weight.dtype).at[:, :k].set(weight.T)
    b_p = jnp.zeros((1, k_pad), bias.dtype).at[0, :k].set(bias)

    out_dtype = x2.dtype
    o_bpe = jnp.dtype(out_dtype).itemsize
    w_bpe = w_p.dtype.itemsize

    def _vmem_bytes(tm_rows: int) -> int:
        # Conservative: count everything as double-buffered.
        return (2 * tm_rows * c * x_bpe
                + 2 * c * k_pad * w_bpe
                + 2 * k_pad * b_p.dtype.itemsize
                + 2 * tm_rows * k_pad * o_bpe)

    # ---- row-tile (tm) selection -----------------------------------------
    n8 = _round_up(n, sub)
    tm = min(_round_up(max(tile_m, sub), sub), n8)

    # v7x megacore: guarantee >=2 row tiles when there is enough work to split
    # (no-op on v5e/v6e which have a single TensorCore).
    if tm >= n8 and n8 >= 2 * 128:
        tm = _round_up(_cdiv(n8, 2), sub)

    # VMEM-budget clamp (v5e scoped default 16 MiB, v7x 32 MiB of 64 MiB).
    while tm > sub and _vmem_bytes(tm) > vmem_budget_bytes:
        tm = max(sub, (tm // 2) // sub * sub)

    if tm >= n:
        tm = n                                     # single full-dim block (always legal)
        grid_m = 1
    else:
        grid_m = _cdiv(n, tm)                      # ragged edge handled by Pallas masking

    needed = _vmem_bytes(tm)
    vmem_limit = int(min(max(needed + (2 << 20), 16 << 20), 48 << 20))

    cost = pl.CostEstimate(
        flops=2 * n * c * k_pad,
        transcendentals=0,
        bytes_accessed=(n * c * x_bpe + c * k_pad * w_bpe
                        + k_pad * b_p.dtype.itemsize + n * k_pad * o_bpe),
    )

    out = pl.pallas_call(
        _linear_kernel,
        out_shape=jax.ShapeDtypeStruct((n, k_pad), out_dtype),
        grid=(grid_m,),
        in_specs=[
            # x row-tiles stream over the grid (double-buffered by Pallas);
            # contraction dim = full C, so x is never copied/padded in HBM.
            pl.BlockSpec((tm, c), lambda i: (i, 0)),
            # weight / bias: constant index_map -> resident across the grid.
            pl.BlockSpec((c, k_pad), lambda i: (0, 0)),
            pl.BlockSpec((1, k_pad), lambda i: (0, 0)),
        ],
        out_specs=pl.BlockSpec((tm, k_pad), lambda i: (i, 0)),
        compiler_params=pltpu.CompilerParams(
            dimension_semantics=("parallel",),     # shard row tiles across TCs on v7x
            vmem_limit_bytes=vmem_limit,
        ),
        cost_estimate=cost,
    )(x2, w_p, b_p)

    # Only the (small) class dim is sliced; rows were never padded.
    return out if k_pad == k else out[:, :k]


if __name__ == "__main__":
    key = jax.random.PRNGKey(0)
    kx, kw, kb = jax.random.split(key, 3)

    in_channels = 32
    num_classes = 8

    # Deterministic synthetic nn.Linear(in_channels, num_classes) parameters.
    weight = jax.random.normal(kw, (num_classes, in_channels), dtype=jnp.float32) * 0.05
    bias = jax.random.normal(kb, (num_classes,), dtype=jnp.float32) * 0.05

    # Case 1: RoI-pooled (N, C, 1, 1) input, small N -> single full-dim block.
    x4 = jax.random.normal(kx, (20, in_channels, 1, 1), dtype=jnp.float32)
    s1 = jax.block_until_ready(fast_rcnn_predictor(x4, weight, bias))
    ref1 = x4.reshape(20, -1) @ weight.T + bias
    assert s1.shape == (20, num_classes)
    assert jnp.allclose(s1, ref1, atol=1e-5, rtol=1e-5)

    # Case 2: already-flat (N, C) input, small tile_m forces a multi-step
    # (double-buffered / pipelined) row grid.
    x2d = jax.random.normal(kx, (24, in_channels), dtype=jnp.float32)
    s2 = jax.block_until_ready(fast_rcnn_predictor(x2d, weight, bias, tile_m=8))
    ref2 = x2d @ weight.T + bias
    assert s2.shape == (24, num_classes)
    assert jnp.allclose(s2, ref2, atol=1e-5, rtol=1e-5)

    print("KERNEL_OK")
</pallas_src>

<mosaic_0001>
module attributes {stable_mosaic.version = 11 : i64} {
  func.func @_linear_kernel(%arg0: i32, %arg1: memref<20x32xf32, #tpu.memory_space<vmem>>, %arg2: memref<32x128xf32, #tpu.memory_space<vmem>>, %arg3: memref<1x128xf32, #tpu.memory_space<vmem>>, %arg4: memref<20x128xf32, #tpu.memory_space<vmem>>) attributes {dimension_semantics = [#tpu.dimension_semantics<parallel>], iteration_bounds = array<i64: 1>, scalar_prefetch = 0 : i64, scratch_operands = 0 : i64, tpu.core_type = #tpu.core_type<tc>, window_params = [{transform_indices = @transform_0, window_bounds = array<i64: 20, 32>}, {pipeline_mode = #tpu.pipeline_mode<synchronous>, transform_indices = @transform_1, window_bounds = array<i64: 32, 128>}, {pipeline_mode = #tpu.pipeline_mode<synchronous>, transform_indices = @transform_2, window_bounds = array<i64: 1, 128>}, {transform_indices = @transform_3, window_bounds = array<i64: 20, 128>}]} {
    %c0 = arith.constant 0 : index
    %c0_0 = arith.constant 0 : index
    %0 = vector.load %arg1[%c0, %c0_0] : memref<20x32xf32, #tpu.memory_space<vmem>>, vector<20x32xf32>
    %c0_1 = arith.constant 0 : index
    %c0_2 = arith.constant 0 : index
    %1 = vector.load %arg2[%c0_1, %c0_2] : memref<32x128xf32, #tpu.memory_space<vmem>>, vector<32x128xf32>
    %cst = arith.constant dense<0.000000e+00> : vector<20x128xf32>
    %2 = tpu.matmul %0, %1, %cst {dimension_numbers = #tpu.dot_dimension_numbers<[1], [0], [0], [1], [0, 0, 1, 1], [], []>} : vector<20x32xf32>, vector<32x128xf32>, vector<20x128xf32> -> vector<20x128xf32>
    %c0_3 = arith.constant 0 : index
    %c0_4 = arith.constant 0 : index
    %3 = vector.load %arg3[%c0_3, %c0_4] : memref<1x128xf32, #tpu.memory_space<vmem>>, vector<1x128xf32>
    %4 = vector.broadcast %3 : vector<1x128xf32> to vector<20x128xf32>
    %5 = arith.addf %2, %4 : vector<20x128xf32>
    %c0_5 = arith.constant 0 : index
    %c0_6 = arith.constant 0 : index
    %6 = vector.load %arg4[%c0_5, %c0_6] : memref<20x128xf32, #tpu.memory_space<vmem>>, vector<20x128xf32>
    tpu.vector_store %arg4[%c0_5, %c0_6], %5 {strides = array<i32>} : memref<20x128xf32, #tpu.memory_space<vmem>>, vector<20x128xf32>,
    return
  }
  func.func @transform_0(%arg0: i32) -> (i32, i32) {
    %c0_i32 = arith.constant 0 : i32
    %c0_i32_0 = arith.constant 0 : i32
    return %arg0, %c0_i32 : i32, i32
  }
  func.func @transform_1(%arg0: i32) -> (i32, i32) {
    %c0_i32 = arith.constant 0 : i32
    %c0_i32_0 = arith.constant 0 : i32
    %c0_i32_1 = arith.constant 0 : i32
    return %c0_i32, %c0_i32_0 : i32, i32
  }
  func.func @transform_2(%arg0: i32) -> (i32, i32) {
    %c0_i32 = arith.constant 0 : i32
    %c0_i32_0 = arith.constant 0 : i32
    %c0_i32_1 = arith.constant 0 : i32
    return %c0_i32, %c0_i32_0 : i32, i32
  }
  func.func @transform_3(%arg0: i32) -> (i32, i32) {
    %c0_i32 = arith.constant 0 : i32
    %c0_i32_0 = arith.constant 0 : i32
    return %arg0, %c0_i32 : i32, i32
  }
}

</mosaic_0001>

<bundles_post_ra>
// kernel: tpu_custom_call.1
= control target key start
LH: loop header
LB: loop body
LE: loop exit
PB: predicated region body
PF: predicated region fallthrough
CT: control target
= control target key end

     0   :  { %8 = vsyncpa [#allocation3], 0  ;;  %s328_s0 = inlined_call_operand.hbm [shape: f32[20,32], index: 0, kind: input, shape index: {}]   ;;  %s329_s1 = inlined_call_operand.hbm [shape: f32[32,128], index: 1, kind: input, shape index: {}]   ;;  %s330_s2 = inlined_call_operand.vmem [shape: f32[1,128], index: 2, kind: input, shape index: {}]   ;;  %s331_s3 = inlined_call_operand.hbm [shape: f32[20,128], index: 3, kind: output, shape index: {}]  }
   0x1   :  { %9 = vsyncpa [#allocation6], 0 }
   0x2   :  { %10 = vsyncpa [#allocation4], 0  ;;  %s277_s12 = smov [#allocation2]  }
   0x3   :  { %s16_s13 = sshll.u32 %s277_s12, 4  ;;  %s17_s13 = int_to_ptr.vmem [resolvable:$true] %s16_s13 }
   0x4   :  { %s219_s14 = scalar_lea.vmem %s17_s13, 384  ;;  %p224_p1 = scmp.lt.s32.totalorder %s17_s13, %s17_s13 }
   0x5   :  { %p220_p0 = scmp.ne.s32.totalorder %s17_s13, %s219_s14  ;;  %p225_p2 = scmp.lt.s32.totalorder %s219_s14, %s219_s14 }
   0x7   :  { %p226_p3 = por %p225_p2, %p224_p1 }
   0x9   :  { %p227_p4 = pnand %p226_p3, %p220_p0 }
   0xb   :  { %230 = shalt.err (!%p227_p4)
}
   0xc   :  { %s278_s15 = smov 128   ;;  %s279_s16 = smov 8  }
   0xd   :  { %22 = dma.hbm_to_vmem [thread:$0]  %s328_s0, 384, %s17_s13, [#allocation3], %s278_s15, %s278_s15, %s279_s16  }
   0xe   :  { %s280_s19 = smov [#allocation5]  }
   0xf   :  { %s28_s20 = sshll.u32 %s280_s19, 4  ;;  %s29_s20 = int_to_ptr.vmem [resolvable:$true] %s28_s20 }
  0x10   :  { %s239_s21 = scalar_lea.vmem %s29_s20, 512  ;;  %p244_p6 = scmp.lt.s32.totalorder %s29_s20, %s29_s20 }
  0x11   :  { %p240_p5 = scmp.ne.s32.totalorder %s29_s20, %s239_s21  ;;  %p245_p7 = scmp.lt.s32.totalorder %s239_s21, %s239_s21 }
  0x13   :  { %p246_p8 = por %p245_p7, %p244_p6 }
  0x15   :  { %p247_p9 = pnand %p246_p8, %p240_p5 }
  0x17   :  { %250 = shalt.err (!%p247_p9)
}
  0x18   :  { %34 = dma.hbm_to_vmem [thread:$0]  %s329_s1, 512, %s29_s20, [#allocation6], %s278_s15, %s278_s15, %s279_s16  }
  0x19   :  { %271 = dma.done.wait [#allocation3], 384  }
  0x1a   :  { %272 = vsyncadd [#allocation3], 4294966912 }
  0x1b   :  { %273 = dma.done.wait [#allocation6], 512  }
  0x1c   :  { %274 = vsyncadd [#allocation6], 4294966784  ;;  %v281_v0 = vmov 0.0   ;;  %vm282_vm0 = vmmov 0   ;;  %v49_v1 = vld [vmem:[#allocation5 + $0x18] sm:$0xff]  ;;  %v48_v2 = vld [vmem:[#allocation5 + $0x10] sm:$0xff] }
  0x1d   :  { %196 = vmatprep.subr.mxu1 %v281_v0  ;;  %179 = vmatprep.subr.mxu0 %v281_v0  ;;  %v47_v3 = vld [vmem:[#allocation5 + $0x8] sm:$0xff]  ;;  %v46_v4 = vld [vmem:[#allocation5] sm:$0xff]  ;;  %v44_v5 = vld [vmem:[#allocation2 + $0x8] sm:$0xff]  ;;  %vm57_vm1 = vcmask 261120   ;;  %s283_s24 = smov [#allocation7]  }
  0x1e   :  { %190 = vmatprep.mubr.msk.f32.mxu1 %vm282_vm0, %v281_v0  ;;  %187 = vmatprep.mubr.msk.f32.mxu0 %vm282_vm0, %v281_v0  ;;  %v43_v6 = vld [vmem:[#allocation2] sm:$0xff]  ;;  %v45_v7 = vld [vmem:[#allocation2 + $0x10] sm:$0xf]  ;;  %s155_s25 = sshll.u32 %s283_s24, 4  ;;  %s156_s25 = int_to_ptr.vmem [resolvable:$true] %s155_s25 }
  0x1f   :  { %200 = vmatpush3.msra.mxu1 %v49_v1  ;;  %180 = vmatpush3.msra.mxu0 %v49_v1  ;;  %v168_v8 = vld [vmem:[%s330_s2] ss:$0 sm:$0xff]  ;;  %s251_s26 = scalar_lea.vmem %s156_s25, 384  ;;  %p256_p11 = scmp.lt.s32.totalorder %s156_s25, %s156_s25 }
  0x20   :  { %197 = vmatprep.subr.mxu1 %v281_v0  ;;  %181 = vmatprep.subr.mxu0 %v281_v0  ;;  %p252_p10 = scmp.ne.s32.totalorder %s156_s25, %s251_s26  ;;  %p257_p12 = scmp.lt.s32.totalorder %s251_s26, %s251_s26 }
  0x21   :  { %201 = vmatpush3.msra.mxu1 %v48_v2  ;;  %182 = vmatpush3.msra.mxu0 %v48_v2 }
  0x22   :  { %198 = vmatprep.subr.mxu1 %v281_v0  ;;  %183 = vmatprep.subr.mxu0 %v281_v0  ;;  %p258_p13 = por %p257_p12, %p256_p11 }
  0x23   :  { %202 = vmatpush3.msra.mxu1 %v47_v3  ;;  %184 = vmatpush3.msra.mxu0 %v47_v3 }
  0x24   :  { %199 = vmatprep.subr.mxu1 %v281_v0  ;;  %185 = vmatprep.subr.mxu0 %v281_v0  ;;  %p259_p0 = pnand %p258_p13, %p252_p10 }
  0x25   :  { %203 = vmatpush3.msra.mxu1 %v46_v4  ;;  %186 = vmatpush3.msra.mxu0 %v46_v4 }
  0x26   :  { %191 = vmatmul.mubr.msk.f32.vlgmr.msra.gmra.mxu1 %vm57_vm1, %v44_v5  ;;  %188 = vmatmul.mubr.msk.f32.vlgmr.msra.gmra.mxu0 %vm57_vm1, %v43_v6 }
  0x27   :  { %193 = vmatprep.mubr.msk.f32.mxu1 %vm282_vm0, %v281_v0 }
  0x2a   :  { %194 = vmatmul.mubr.msk.f32.gmra.mxu1 %vm57_vm1, %v45_v7 }
  0xe6   :  { %v138_v9 = vpop.f32.mrf.mxu1  ;;  %v133_v10 = vpop.f32.mrf.mxu0 }
  0xe7   :  { %v139_v11 = vadd.f32 %v168_v8, %v138_v9  ;;  %v134_v12 = vadd.f32 %v168_v8, %v133_v10 }
  0xe8   :  { %v192_v13 = vpop.f32.mrf.mxu1  ;;  %v189_v14 = vpop.f32.mrf.mxu0 }
  0xe9   :  { %148 = vst [vmem:[#allocation7 + $0x8] sm:$0xff] %v139_v11  ;;  %147 = vst [vmem:[#allocation7] sm:$0xff] %v134_v12 }
  0xea   :  { %v143_v15 = vpop.f32.mrf.mxu1 }
  0xeb   :  { %v144_v16 = vadd.f32 %v168_v8, %v143_v15 }
  0xec   :  { %v195_v17 = vpop.f32.mrf.mxu1 }
  0xed   :  { %149 = vst [vmem:[#allocation7 + $0x10] sm:$0xf] %v144_v16 }
  0xee   :  { %262 = shalt.err (!%p259_p0)
}
  0xef   :  { %161 = dma.vmem_to_hbm [thread:$0]  %s156_s25, 384, %s331_s3, [#allocation4], %s278_s15, %s278_s15, %s279_s16  }
  0xf0   :  { %275 = dma.done.wait [#allocation4], 384  }
  0xf1   :  { %276 = vsyncadd [#allocation4], 4294966912 }
  0xf2   :  { %165 = vsyncpa [#allocation3], 1 }
  0xf3   :  { %166 = vsyncpa [#allocation6], 1 }
  0xf4   :  { %167 = vsyncpa [#allocation4], 1 }

</bundles_post_ra>
